<compile_context>
chip_gen: v7x
topology: tpu7x:2x2x1
jax: 0.10.0
libtpu: 0.0.40
codegen_flags: <defaults>
</compile_context>

<pallas_src>
import jax
import jax.numpy as jnp
from jax.experimental import pallas as pl
from jax.experimental.pallas import tpu as pltpu


# ----------------------------------------------------------------------------
# Reference (pure JAX) implementation, mirrors the PyTorch forward.
# ----------------------------------------------------------------------------
def patchify(x, p):
    """MAE patchify: (N, C, H, W) -> (N, L, p*p*C), L = (H/p)*(W/p)."""
    N, C, H, W = x.shape
    h, w = H // p, W // p
    x = x.reshape(N, C, h, p, w, p)
    x = jnp.transpose(x, (0, 2, 4, 3, 5, 1))  # n h w p q c
    return x.reshape(N, h * w, p * p * C)


def mae_loss_ref(logits_img, input_img, mask, patch_size):
    a = patchify(logits_img, patch_size).astype(jnp.float32)
    b = patchify(input_img, patch_size).astype(jnp.float32)
    l = jnp.mean((a - b) ** 2, axis=-1)
    return jnp.sum(l * mask) / jnp.sum(mask)


# ----------------------------------------------------------------------------
# Kernel
# ----------------------------------------------------------------------------
def _mae_loss_kernel(pred_ref, tgt_ref, w_ref, out_ref):
    """One (kn, C, th, W) tile: accumulate sum(diff^2 * mask_pix) into out_ref.

    out_ref is a (1, 1) per-core accumulator; its block index depends only on
    the leading (core) grid axis, so it stays resident in VMEM across both
    reduction axes (steps over image blocks, steps over H strips).
    """
    @pl.when(jnp.logical_and(pl.program_id(1) == 0, pl.program_id(2) == 0))
    def _():
        out_ref[...] = jnp.zeros_like(out_ref)

    # Upcast per-tile (inputs may be bf16); all math in f32.
    d = pred_ref[...].astype(jnp.float32) - tgt_ref[...].astype(jnp.float32)
    # w_ref is (kn, 1, th, W): the broadcast over the channel axis is a
    # leading-dim broadcast (vreg reuse), no data movement.
    contrib = d * d * w_ref[...].astype(jnp.float32)
    out_ref[...] += jnp.sum(contrib).reshape(1, 1)


# ----------------------------------------------------------------------------
# Tiling / hardware helpers
# ----------------------------------------------------------------------------
def _ceil_to(x, m):
    return -(-x // m) * m


def _sublane_mult(itemsize):
    # f32 -> 8, bf16 -> 16, int8 -> 32 sublane tiling.
    return max(8, 32 // max(1, itemsize))


def _vmem_limit_bytes():
    cap = 64 * 1024 * 1024
    try:
        info = pltpu.get_tpu_info()
        cap = int(getattr(info, "vmem_capacity_bytes", 0)) or cap
    except Exception:
        pass
    # ~48 MiB on v7x (64 MiB physical), ~96 MiB on v5e/v6e (128 MiB physical).
    return max(32 * 1024 * 1024, min(cap * 3 // 4, cap - 8 * 1024 * 1024))


def _detect_num_cores():
    try:
        info = pltpu.get_tpu_info()
        for name in ("num_cores", "core_count", "num_tensorcores",
                     "tensorcores_per_chip"):
            v = getattr(info, name, None)
            if isinstance(v, int) and v in (1, 2):
                return v
    except Exception:
        pass
    try:
        kind = jax.devices()[0].device_kind.lower().replace(" ", "")
        if "7x" in kind or "v7" in kind or kind.startswith("tpu7"):
            return 2  # v7x: 2 TensorCores per chip
    except Exception:
        pass
    return 1  # v5e / v6e


def _pick_tiles(N, C, H, W, in_itemsize, w_itemsize, budget, num_cores):
    """Choose (kn images per block, th rows per strip), pad-aware."""
    Wl = _ceil_to(W, 128)  # lane padding of the last dim

    def vmem_need(kn, th):
        th_in = _ceil_to(th, _sublane_mult(in_itemsize))
        th_w = _ceil_to(th, _sublane_mult(w_itemsize))
        th_32 = _ceil_to(th, 8)
        inputs = 2 * 2 * kn * C * th_in * Wl * in_itemsize   # 2 inputs x dbl buffer
        weights = 2 * kn * 1 * th_w * Wl * w_itemsize        # mask map, dbl buffer
        temps = 2 * kn * C * th_32 * Wl * 4                  # f32 elementwise temps
        return inputs + weights + temps

    # Preferred: whole-image blocks (th = H), kn a divisor of N.
    divisors = [d for d in range(1, N + 1) if N % d == 0 and vmem_need(d, H) <= budget]
    if divisors:
        # Prefer leaving >= 2 blocks per core (pipelining), then >= 1 per core.
        for min_blocks in (2 * num_cores, num_cores, 1):
            ok = [d for d in divisors if (N // d) >= min_blocks]
            if ok:
                return max(ok), H
        return max(divisors), H

    # Images too large for a whole-image block: tile H (kn = 1).
    th_opts = [d for d in range(8, H + 1, 8) if H % d == 0] or [H]
    fitting = [d for d in th_opts if vmem_need(1, d) <= budget]
    return 1, (max(fitting) if fitting else min(th_opts))


# ----------------------------------------------------------------------------
# Wrapper
# ----------------------------------------------------------------------------
def _mae_loss_impl(logits_img, input_img, mask, patch_size, num_cores,
                   use_core_parallel):
    N, C, H, W = logits_img.shape
    p = patch_size
    hp, wp = H // p, W // p
    D = p * p * C

    in_dtype = logits_img.dtype
    in_itemsize = jnp.dtype(in_dtype).itemsize
    # 0/1 mask values are exact in any float dtype; keep the map in the input
    # dtype to minimize the (already small) extra HBM traffic.
    w_dtype = in_dtype if jnp.issubdtype(in_dtype, jnp.floating) else jnp.float32
    w_itemsize = jnp.dtype(w_dtype).itemsize

    vmem_limit = _vmem_limit_bytes()
    budget = int(vmem_limit * 0.8)

    num_cores = max(1, min(num_cores, N))
    kn, th = _pick_tiles(N, C, H, W, in_itemsize, w_itemsize, budget, num_cores)

    nblocks = N // kn
    if nblocks < num_cores:
        num_cores = 1
        use_core_parallel = False
    steps = -(-nblocks // num_cores)
    n_pad_imgs = num_cores * steps * kn
    h_steps = H // th

    # Per-pixel mask map (N, 1, H, W): each pixel gets the mask value of the
    # patch it belongs to.  Only ~1/(2*C) of the image read traffic.
    # TODO(synk): a per-patch-column (N, 1, H, W/p) map with an in-kernel lane
    # broadcast would shave this further; kept per-pixel for layout safety.
    wmap = jnp.broadcast_to(
        mask.reshape(N, hp, 1, wp, 1).astype(w_dtype), (N, hp, p, wp, p)
    ).reshape(N, 1, H, W)
    if n_pad_imgs > N:
        # Zero mask for the (at most num_cores-1) tail blocks; the matching
        # data blocks are clamped to the last valid block, so they re-read
        # finite data and contribute exactly zero (no 0 * inf/nan hazard).
        wmap = jnp.pad(wmap, ((0, n_pad_imgs - N), (0, 0), (0, 0), (0, 0)))

    def data_map(c, s, h):
        b = jnp.minimum(c * steps + s, nblocks - 1)
        return (b, 0, h, 0)

    def weight_map(c, s, h):
        return (c * steps + s, 0, h, 0)

    core_sem = pltpu.CORE_PARALLEL if use_core_parallel else pltpu.ARBITRARY

    cost = pl.CostEstimate(
        flops=4 * N * C * H * W,
        transcendentals=0,
        bytes_accessed=(2 * N * C * H * W * in_itemsize
                        + N * H * W * w_itemsize + num_cores * 4),
    )

    partial = pl.pallas_call(
        _mae_loss_kernel,
        out_shape=jax.ShapeDtypeStruct((num_cores, 1, 1), jnp.float32),
        grid_spec=pltpu.PrefetchScalarGridSpec(
            num_scalar_prefetch=0,
            grid=(num_cores, steps, h_steps),
            in_specs=[
                pl.BlockSpec((kn, C, th, W), data_map),
                pl.BlockSpec((kn, C, th, W), data_map),
                pl.BlockSpec((kn, 1, th, W), weight_map),
            ],
            # Leading dim squeezed: kernel sees a (1, 1) accumulator; one
            # block per TensorCore so the core axis is race-free.
            out_specs=pl.BlockSpec((None, 1, 1), lambda c, s, h: (c, 0, 0)),
        ),
        compiler_params=pltpu.CompilerParams(
            dimension_semantics=(core_sem, pltpu.ARBITRARY, pltpu.ARBITRARY),
            vmem_limit_bytes=int(vmem_limit),
        ),
        cost_estimate=cost,
    )(logits_img, input_img, wmap)

    num = jnp.sum(partial)                       # sum of per-core partials
    den = jnp.sum(mask.astype(jnp.float32))      # tiny; computed in the wrapper
    return num / (jnp.float32(D) * den)


def mae_loss(logits_img, input_img, mask, patch_size):
    """logits_img, input_img: (N, C, H, W); mask: (N, L) with L = (H/p)*(W/p)."""
    num_cores = _detect_num_cores()
    try:
        return _mae_loss_impl(logits_img, input_img, mask, patch_size,
                              num_cores, use_core_parallel=(num_cores > 1))
    except Exception:
        if num_cores == 1:
            raise
        # Conservative single-core retry (e.g. CORE_PARALLEL not supported on
        # this chip / runtime).
        return _mae_loss_impl(logits_img, input_img, mask, patch_size,
                              1, use_core_parallel=False)


if __name__ == "__main__":
    # Small shapes: N=2, C=4, H=W=16, patch=4 -> L=16, D=64
    N, C, H, W, P = 2, 4, 16, 16, 4
    L = (H // P) * (W // P)

    key = jax.random.PRNGKey(0)
    k1, k2, k3 = jax.random.split(key, 3)
    logits_img = jax.random.normal(k1, (N, C, H, W), dtype=jnp.float32)
    input_img = jax.random.normal(k2, (N, C, H, W), dtype=jnp.float32)
    # Binary mask over patches (1 = masked patch contributes to loss), as in MAE.
    mask = (jax.random.uniform(k3, (N, L)) > 0.5).astype(jnp.float32)
    # Guarantee mask.sum() > 0 (PyTorch module would NaN otherwise; kept as-is).
    mask = mask.at[0, 0].set(1.0)

    loss = jax.block_until_ready(mae_loss(logits_img, input_img, mask, P))
    ref = jax.block_until_ready(mae_loss_ref(logits_img, input_img, mask, P))

    assert jnp.allclose(loss, ref, rtol=1e-5, atol=1e-6), (loss, ref)
    print("KERNEL_OK")
</pallas_src>

<mosaic_0001>
module attributes {stable_mosaic.version = 11 : i64} {
  func.func @_mae_loss_kernel(%arg0: i32, %arg1: i32, %arg2: i32, %arg3: memref<1x4x16x16xf32, #tpu.memory_space<vmem>>, %arg4: memref<1x4x16x16xf32, #tpu.memory_space<vmem>>, %arg5: memref<1x1x16x16xf32, #tpu.memory_space<vmem>>, %arg6: memref<1x1x1xf32, #tpu.memory_space<vmem>>) attributes {dimension_semantics = [#tpu.dimension_semantics<arbitrary>, #tpu.dimension_semantics<arbitrary>, #tpu.dimension_semantics<arbitrary>], iteration_bounds = array<i64: 1, 2, 1>, scalar_prefetch = 0 : i64, scratch_operands = 0 : i64, tpu.core_type = #tpu.core_type<tc>, window_params = [{transform_indices = @transform_0, window_bounds = array<i64: 1, 4, 16, 16>}, {transform_indices = @transform_1, window_bounds = array<i64: 1, 4, 16, 16>}, {transform_indices = @transform_2, window_bounds = array<i64: 1, 1, 16, 16>}, {transform_indices = @transform_3, window_bounds = array<i64: 1, 1, 1>}]} {
    %c0_i32 = arith.constant 0 : i32
    %0 = arith.cmpi eq, %arg1, %c0_i32 : i32
    %c0_i32_0 = arith.constant 0 : i32
    %1 = arith.cmpi eq, %arg2, %c0_i32_0 : i32
    %2 = arith.andi %0, %1 : i1
    %3 = arith.extui %2 : i1 to i32
    %c0_i32_1 = arith.constant 0 : i32
    %4 = arith.cmpi ne, %3, %c0_i32_1 : i32
    scf.if %4 {
      %cst_19 = arith.constant 0.000000e+00 : f32
      %23 = vector.broadcast %cst_19 : f32 to vector<1x1xf32>
      %c0_20 = arith.constant 0 : index
      %c0_21 = arith.constant 0 : index
      %c0_22 = arith.constant 0 : index
      %24 = vector.load %arg6[%c0_20, %c0_21, %c0_22] : memref<1x1x1xf32, #tpu.memory_space<vmem>>, vector<1x1x1xf32>
      %25 = vector.shape_cast %24 : vector<1x1x1xf32> to vector<1x1xf32>
      %26 = vector.shape_cast %23 : vector<1x1xf32> to vector<1x1x1xf32>
      tpu.vector_store %arg6[%c0_20, %c0_21, %c0_22], %26 {strides = array<i32>} : memref<1x1x1xf32, #tpu.memory_space<vmem>>, vector<1x1x1xf32>,
    } else {
    }
    %c0 = arith.constant 0 : index
    %c0_2 = arith.constant 0 : index
    %c0_3 = arith.constant 0 : index
    %c0_4 = arith.constant 0 : index
    %5 = vector.load %arg3[%c0, %c0_2, %c0_3, %c0_4] : memref<1x4x16x16xf32, #tpu.memory_space<vmem>>, vector<1x4x16x16xf32>
    %c0_5 = arith.constant 0 : index
    %c0_6 = arith.constant 0 : index
    %c0_7 = arith.constant 0 : index
    %c0_8 = arith.constant 0 : index
    %6 = vector.load %arg4[%c0_5, %c0_6, %c0_7, %c0_8] : memref<1x4x16x16xf32, #tpu.memory_space<vmem>>, vector<1x4x16x16xf32>
    %7 = arith.subf %5, %6 : vector<1x4x16x16xf32>
    %8 = arith.mulf %7, %7 : vector<1x4x16x16xf32>
    %c0_9 = arith.constant 0 : index
    %c0_10 = arith.constant 0 : index
    %c0_11 = arith.constant 0 : index
    %c0_12 = arith.constant 0 : index
    %9 = vector.load %arg5[%c0_9, %c0_10, %c0_11, %c0_12] : memref<1x1x16x16xf32, #tpu.memory_space<vmem>>, vector<1x1x16x16xf32>
    %10 = vector.broadcast %9 : vector<1x1x16x16xf32> to vector<1x4x16x16xf32>
    %11 = arith.mulf %8, %10 : vector<1x4x16x16xf32>
    %c0_13 = arith.constant 0 : index
    %c0_14 = arith.constant 0 : index
    %c0_15 = arith.constant 0 : index
    %12 = vector.load %arg6[%c0_13, %c0_14, %c0_15] : memref<1x1x1xf32, #tpu.memory_space<vmem>>, vector<1x1x1xf32>
    %13 = vector.shape_cast %12 : vector<1x1x1xf32> to vector<1x1xf32>
    %14 = vector.shape_cast %11 : vector<1x4x16x16xf32> to vector<1x1x4x16x16xf32>
    %cst = arith.constant dense<0.000000e+00> : vector<1xf32>
    %15 = vector.multi_reduction <add>, %14, %cst [1, 2, 3, 4] : vector<1x1x4x16x16xf32> to vector<1xf32>
    %16 = vector.shape_cast %15 : vector<1xf32> to vector<1x1x1x1x1xf32>
    %17 = vector.extract %16[0, 0, 0, 0, 0] : f32 from vector<1x1x1x1x1xf32>
    %18 = vector.broadcast %17 : f32 to vector<1x1xf32>
    %19 = arith.addf %13, %18 : vector<1x1xf32>
    %c0_16 = arith.constant 0 : index
    %c0_17 = arith.constant 0 : index
    %c0_18 = arith.constant 0 : index
    %20 = vector.load %arg6[%c0_16, %c0_17, %c0_18] : memref<1x1x1xf32, #tpu.memory_space<vmem>>, vector<1x1x1xf32>
    %21 = vector.shape_cast %20 : vector<1x1x1xf32> to vector<1x1xf32>
    %22 = vector.shape_cast %19 : vector<1x1xf32> to vector<1x1x1xf32>
    tpu.vector_store %arg6[%c0_16, %c0_17, %c0_18], %22 {strides = array<i32>} : memref<1x1x1xf32, #tpu.memory_space<vmem>>, vector<1x1x1xf32>,
    return
  }
  func.func @transform_0(%arg0: i32, %arg1: i32, %arg2: i32) -> (i32, i32, i32, i32) {
    %c2_i32 = arith.constant 2 : i32
    %0 = arith.muli %arg0, %c2_i32 : i32
    %1 = arith.addi %0, %arg1 : i32
    %c1_i32 = arith.constant 1 : i32
    %2 = arith.minsi %1, %c1_i32 : i32
    %c0_i32 = arith.constant 0 : i32
    %c0_i32_0 = arith.constant 0 : i32
    %c0_i32_1 = arith.constant 0 : i32
    return %2, %c0_i32, %arg2, %c0_i32_0 : i32, i32, i32, i32
  }
  func.func @transform_1(%arg0: i32, %arg1: i32, %arg2: i32) -> (i32, i32, i32, i32) {
    %c2_i32 = arith.constant 2 : i32
    %0 = arith.muli %arg0, %c2_i32 : i32
    %1 = arith.addi %0, %arg1 : i32
    %c1_i32 = arith.constant 1 : i32
    %2 = arith.minsi %1, %c1_i32 : i32
    %c0_i32 = arith.constant 0 : i32
    %c0_i32_0 = arith.constant 0 : i32
    %c0_i32_1 = arith.constant 0 : i32
    return %2, %c0_i32, %arg2, %c0_i32_0 : i32, i32, i32, i32
  }
  func.func @transform_2(%arg0: i32, %arg1: i32, %arg2: i32) -> (i32, i32, i32, i32) {
    %c2_i32 = arith.constant 2 : i32
    %0 = arith.muli %arg0, %c2_i32 : i32
    %1 = arith.addi %0, %arg1 : i32
    %c0_i32 = arith.constant 0 : i32
    %c0_i32_0 = arith.constant 0 : i32
    %c0_i32_1 = arith.constant 0 : i32
    return %1, %c0_i32, %arg2, %c0_i32_0 : i32, i32, i32, i32
  }
  func.func @transform_3(%arg0: i32, %arg1: i32, %arg2: i32) -> (i32, i32, i32) {
    %c0_i32 = arith.constant 0 : i32
    %c0_i32_0 = arith.constant 0 : i32
    %c0_i32_1 = arith.constant 0 : i32
    return %arg0, %c0_i32, %c0_i32_0 : i32, i32, i32
  }
}

</mosaic_0001>

<bundles_post_ra>
// kernel: tpu_custom_call.1
= control target key start
LH: loop header
LB: loop body
LE: loop exit
PB: predicated region body
PF: predicated region fallthrough
CT: control target
= control target key end

     0   :  { %s1235_s0 = inlined_call_operand.hbm [shape: f32[2,4,16,16], index: 0, kind: input, shape index: {}]   ;;  %s1236_s1 = inlined_call_operand.hbm [shape: f32[2,4,16,16], index: 1, kind: input, shape index: {}]   ;;  %s1237_s2 = inlined_call_operand.hbm [shape: f32[2,1,16,16], index: 2, kind: input, shape index: {}]   ;;  %s1238_s3 = inlined_call_operand.hbm [shape: f32[1,1,1], index: 3, kind: output, shape index: {}]  }
   0x1   :  { %1249 = sst [smem:[#allocation13_spill]] %s1236_s1 }
   0x2   :  { %8 = vsyncpa [#allocation3], 0 }
   0x3   :  { %10 = vsyncpa [#allocation3 + $0x1], 0 }
   0x4   :  { %11 = vsyncpa [#allocation6], 0 }
   0x5   :  { %13 = vsyncpa [#allocation6 + $0x1], 0 }
   0x6   :  { %14 = vsyncpa [#allocation4], 0  ;;  %s897_s12 = smov 0   ;;  %s899_s13 = smov 0  }
   0x7   :  { %s901_s14 = smov 0   ;;  %s903_s15 = smov 0  }
   0x8   :  { %s905_s16 = smov 0   ;;  %s907_s17 = smov 0  }
   0x9   :  { %s909_s18 = smov 0   ;;  %s911_s19 = smov 0  }
   0xa   :  { %s913_s20 = smov 0  }
   0xb LB: > { %s941_s21 = sadd.s32 4294967295, %s868_s20   ;;  %s35_s22 = sadd.s32 1, %s864_s19  ;;  %s868_s20 = sphi %s913_s20, %s20_s20   ;;  %s864_s19 = sphi %s911_s19, %s1274_s19   ;;  %s860_s18 = sphi %s909_s18, %s1273_s18   ;;  %s856_s17 = sphi %s907_s17, %s1272_s17   ;;  %s852_s16 = sphi %s905_s16, %s1271_s16   ;;  %s848_s15 = sphi %s903_s15, %s1270_s15   ;;  %s844_s14 = sphi %s901_s14, %s1269_s14   ;;  %s840_s13 = sphi %s899_s13, %s1268_s13   ;;  %s836_s12 = sphi %s897_s12, %s1267_s12  }
   0xc   : > { %p37_p0 = scmp.ge.s32.totalorder %s35_s22, 2  ;;  %p45_p1 = scmp.lt.s32.totalorder %s864_s19, 1 }
   0xd   : > { %s56_s23 = sadd.s32 1, %s856_s17  ;;  %p63_p2 = scmp.ne.s32.totalorder %s856_s17, %s852_s16 }
   0xe   : > { %s1276_s22 = smov (%p37_p0, %s35_s22), 0  ;;  %p1243_p4 = scmp.eq.s32.totalorder %s868_s20, 0 }
   0xf   : > { %s951_s24 = scalar_select %p45_p1, %s864_s19, 1 }
  0x10   : > { %p49_p3 = scmp.lt.s32.totalorder %s1276_s22, 1  ;;  %p69_p5 = scmp.ne.s32.totalorder %s852_s16, %s848_s15 }
  0x11   : > { %p1242_p6 = scmp.eq.s32.totalorder %s941_s21, 0  ;;  %p65_p7 = por %p1243_p4, %p63_p2 }
  0x12   : > { %s50_s25 = scalar_select %p49_p3, %s1276_s22, 1 }
  0x13   : > { %p962_p8 = por %p1242_p6, %p69_p5  ;;  %s119_s28 = ssub.s32 %s864_s19, %s1276_s22 }
  0x14   : > { %s51_s27 = ssub.s32 %s951_s24, %s50_s25  ;;  %p969_p10 = scmp.eq.s32.totalorder %s119_s28, 0 }
  0x15   : > { %s1250_s26 = scalar_select %p962_p8, 1, 0 }
  0x16   : > { %p54_p9 = scmp.eq.s32.totalorder %s51_s27, 0  ;;  %p1241_p11 = scmp.lt.s32.totalorder %s868_s20, 2 }
  0x17   : > { %s1239_s4 = sand.u32 1, %s856_s17   ;;  %s1240_s5 = sshll.u32 %s951_s24, 10 }
  0x18   : > { %s975_s30 = scalar_select %p54_p9, %s856_s17, %s56_s23  }
  0x19   : > { %s981_s6 = sshll.u32 %s1239_s4, 6  ;;  %p985_p12 = pnand %p1241_p11, %p65_p7 }
  0x1a   : > { %s214_s8 = sand.u32 1, %s868_s20   ;;  %s1253_s1 = sld [smem:[#allocation13_spill]] }
  0x1b   : > { %s218_s15 = scalar_lea.vmem [#allocation5], %s981_s6  ;;  %s1001_s25 = scalar_lea.sflag [#allocation6], %s214_s8 }
  0x1c   : > { %s231_s23 = sshll.u32 %s218_s15, 4  ;;  %p668_p1 = pneg %p985_p12  ;;  %s998_s23 = int_to_ptr.vmem [resolvable:$true] %s231_s23 }
  0x20   : > { %s995_s11 = scalar_lea.hbm %s1253_s1, %s1240_s5  ;;  %s671_s10 = scalar_lea.hbm %s1253_s1, 2048 }
  0x21   : > { %s666_s27 = scalar_lea.hbm %s995_s11, 1024  ;;  %p672_p5 = scmp.lt.u32.totalorder %s995_s11, %s1253_s1 }
  0x22   : > { %p667_p0 = scmp.ne.s32.totalorder %s995_s11, %s666_s27  ;;  %p673_p7 = scmp.lt.u32.totalorder %s671_s10, %s666_s27 }
  0x23   : > { %p675_p11 = scmp.lt.u32.totalorder %s666_s27, %s995_s11 }
  0x24   : > { %p669_p2 = pnand %p668_p1, %p667_p0  ;;  %p674_p9 = por %p673_p7, %p672_p5 }
  0x26   : > { %p670_p3 = pneg %p669_p2  ;;  %p676_p6 = por %p675_p11, %p674_p9 }
  0x28   : > { %p677_p4 = pnand %p676_p6, %p670_p3 }
  0x2a   : > { %680 = shalt.err (!%p677_p4)
}
  0x2b   : > { %s681_s8 = scalar_lea.vmem %s998_s23, 1024  ;;  %s870_s15 = smov [#allocation5]  }
  0x2c   : > { %p682_p0 = scmp.ne.s32.totalorder %s998_s23, %s681_s8  ;;  %s686_s28 = sshll.u32 %s870_s15, 4  ;;  %s687_s28 = int_to_ptr.vmem [resolvable:$false] %s686_s28 }
  0x2d   : > { %s688_s4 = scalar_lea.vmem %s687_s28, 2048  ;;  %p689_p8 = scmp.lt.s32.totalorder %s998_s23, %s687_s28 }
  0x2e   : > { %p684_p2 = pnand %p682_p0, %p668_p1  ;;  %p690_p5 = scmp.lt.s32.totalorder %s688_s4, %s681_s8 }
  0x30   : > { %p685_p13 = pneg %p684_p2  ;;  %p691_p7 = por %p690_p5, %p689_p8 }
  0x32   : > { %p692_p11 = pnand %p691_p7, %p685_p13 }
  0x34   : > { %695 = shalt.err (!%p692_p11)
}
  0x35   : > { %s1245_s5 = smov 128   ;;  %s1247_s27 = smov 8  }
  0x36   : > { %583 = dma.hbm_to_vmem [thread:$0]  (!%p985_p12), %s995_s11, 1024, %s998_s23, %s1001_s25, %s1245_s5, %s1245_s5, %s1247_s27  }
  0x37   : > { %p264_p4 = scmp.lt.s32.totalorder %s868_s20, 3  ;;  %p1254_p6 = scmp.ge.s32.totalorder %s868_s20, 1 }
  0x38   : > { %s1256_s10 = sshll.u32 %s951_s24, 10  ;;  %s191_s4 = scalar_lea.vmem [#allocation2], %s981_s6 }
  0x39   : > { %p1035_p8 = pnand %p1254_p6, %p264_p4  ;;  %s1044_s28 = scalar_lea.hbm %s1235_s0, %s1256_s10 }
  0x3a   : > { %s204_s1 = sshll.u32 %s191_s4, 4  ;;  %s1257_s11 = sand.u32 1, %s856_s17   ;;  %s1047_s1 = int_to_ptr.vmem [resolvable:$true] %s204_s1 }
  0x3b   : > { %s1255_s9 = scalar_select %p1035_p8, 1, 0 }
  0x3c   : > { %s1051_s23 = scalar_lea.sflag [#allocation3], %s1257_s11  ;;  %s696_s5 = scalar_lea.hbm %s1044_s28, 1024 }
  0x3d   : > { %p697_p13 = scmp.ne.s32.totalorder %s1044_s28, %s696_s5  ;;  %s701_s8 = scalar_lea.hbm %s1235_s0, 2048 }
  0x3e   : > { %p702_p0 = scmp.lt.u32.totalorder %s1044_s28, %s1235_s0  ;;  %p703_p2 = scmp.lt.u32.totalorder %s701_s8, %s696_s5 }
  0x3f   : > { %p699_p3 = pnand %p697_p13, %p668_p1  ;;  %p705_p7 = scmp.lt.u32.totalorder %s696_s5, %s1044_s28 }
  0x40   : > { %p704_p5 = por %p703_p2, %p702_p0 }
  0x41   : > { %p700_p9 = pneg %p699_p3 }
  0x42   : > { %p706_p11 = por %p705_p7, %p704_p5 }
  0x44   : > { %p707_p4 = pnand %p706_p11, %p700_p9 }
  0x46   : > { %710 = shalt.err (!%p707_p4)
}
  0x47   : > { %s711_s6 = scalar_lea.vmem %s1047_s1, 1024  ;;  %s873_s4 = smov [#allocation2]  }
  0x48   : > { %p712_p6 = scmp.ne.s32.totalorder %s1047_s1, %s711_s6  ;;  %s716_s11 = sshll.u32 %s873_s4, 4  ;;  %s717_s11 = int_to_ptr.vmem [resolvable:$false] %s716_s11 }
  0x49   : > { %s718_s27 = scalar_lea.vmem %s717_s11, 2048  ;;  %p719_p8 = scmp.lt.s32.totalorder %s1047_s1, %s717_s11 }
  0x4a   : > { %p714_p13 = pnand %p712_p6, %p668_p1  ;;  %p720_p0 = scmp.lt.s32.totalorder %s718_s27, %s711_s6 }
  0x4c   : > { %p715_p3 = pneg %p714_p13  ;;  %p721_p2 = por %p720_p0, %p719_p8 }
  0x4e   : > { %p722_p5 = pnand %p721_p2, %p715_p3 }
  0x50   : > { %725 = shalt.err (!%p722_p5)
}
  0x51   : > { %s1258_s5 = smov 8   ;;  %s1259_s24 = smov 128  }
  0x52   : > { %580 = dma.hbm_to_vmem [thread:$0]  (!%p985_p12), %s1044_s28, 1024, %s1047_s1, %s1051_s23, %s1259_s24, %s1259_s24, %s1258_s5  }
  0x53   : > { %s124_s7 = sadd.s32 1, %s844_s14  ;;  %p131_p1 = scmp.ne.s32.totalorder %s844_s14, %s840_s13 }
  0x54   : > { %s1084_s10 = scalar_select %p969_p10, %s844_s14, %s124_s7  }
  0x55   : > { %p137_p8 = scmp.ne.s32.totalorder %s840_s13, %s836_s12  ;;  %s243_s8 = sand.u32 1, %s844_s14  }
  0x56   : > { %s563_s15 = sshll.u32 %s864_s19, 8  ;;  %p1260_p9 = scmp.eq.s32.totalorder %s868_s20, 0 }
  0x57   : > { %p1261_p11 = scmp.eq.s32.totalorder %s941_s21, 0  ;;  %s549_s4 = sshll.u32 %s243_s8, 4 }
  0x58   : > { %p133_p7 = por %p131_p1, %p1260_p9  ;;  %s1103_s1 = scalar_lea.hbm %s1237_s2, %s563_s15 }
  0x59   : > { %p1096_p4 = por %p137_p8, %p1261_p11  ;;  %p1263_p12 = scmp.lt.s32.totalorder %s868_s20, 2 }
  0x5a   : > { %s245_s29 = scalar_lea.vmem [#allocation7], %s549_s4  ;;  %s726_s23 = scalar_lea.hbm %s1103_s1, 256 }
  0x5b   : > { %p1107_p10 = pnand %p1263_p12, %p133_p7  ;;  %s256_s28 = sshll.u32 %s245_s29, 4  ;;  %s1111_s28 = int_to_ptr.vmem [resolvable:$true] %s256_s28 }
  0x5c   : > { %p727_p6 = scmp.ne.s32.totalorder %s1103_s1, %s726_s23  ;;  %s731_s15 = scalar_lea.hbm %s1237_s2, 512 }
  0x5d   : > { %p728_p13 = pneg %p1107_p10  ;;  %p732_p2 = scmp.lt.u32.totalorder %s1103_s1, %s1237_s2 }
  0x5e   : > { %p733_p5 = scmp.lt.u32.totalorder %s731_s15, %s726_s23  ;;  %p735_p8 = scmp.lt.u32.totalorder %s726_s23, %s1103_s1 }
  0x5f   : > { %p729_p3 = pnand %p728_p13, %p727_p6 }
  0x60   : > { %p734_p1 = por %p733_p5, %p732_p2 }
  0x61   : > { %p730_p0 = pneg %p729_p3 }
  0x62   : > { %p736_p9 = por %p735_p8, %p734_p1 }
  0x64   : > { %p737_p7 = pnand %p736_p9, %p730_p0 }
  0x66   : > { %740 = shalt.err (!%p737_p7)
}
  0x67   : > { %s741_s4 = scalar_lea.vmem %s1111_s28, 256  ;;  %s874_s29 = smov [#allocation7]  }
  0x68   : > { %p742_p11 = scmp.ne.s32.totalorder %s1111_s28, %s741_s4  ;;  %s746_s7 = sshll.u32 %s874_s29, 4  ;;  %s747_s7 = int_to_ptr.vmem [resolvable:$false] %s746_s7 }
  0x69   : > { %s748_s8 = scalar_lea.vmem %s747_s7, 512  ;;  %p749_p3 = scmp.lt.s32.totalorder %s1111_s28, %s747_s7 }
  0x6a   : > { %p744_p12 = pnand %p742_p11, %p728_p13  ;;  %p750_p2 = scmp.lt.s32.totalorder %s748_s8, %s741_s4 }
  0x6c   : > { %p745_p6 = pneg %p744_p12  ;;  %p751_p5 = por %p750_p2, %p749_p3 }
  0x6e   : > { %p752_p1 = pnand %p751_p5, %p745_p6 }
  0x70   : > { %755 = shalt.err (!%p752_p1)
}
  0x71   : > { %586 = dma.hbm_to_vmem [thread:$0]  (!%p1107_p10), %s1103_s1, 256, %s1111_s28, %s1001_s25, %s1259_s24, %s1259_s24, %s1258_s5  }
  0x72   : > { %p1265_p13 = scmp.ne.s32.totalorder %s1255_s9, 0 }
  0x73   : > { %s270_s23 = sand.u32 (!%p1265_p13), 1, %s852_s16   ;;  %p1266_p0 = scmp.ne.s32.totalorder (!%p1265_p13), %s1250_s26, 0 }
  0x74   : > { %268 = sbr.rel (%p1265_p13) target bundleno = 387 (0x183), region = 32  ;;  %s553_s15 = sshll.u32 (!%p1265_p13), %s270_s23, 6 }
  0x75   : > { %s271_s11 = scalar_lea.sflag (!%p1265_p13), [#allocation3], %s270_s23  ;;  %s274_s27 = scalar_lea.vmem (!%p1265_p13), [#allocation2], %s553_s15 }
  0x7b   : > { %819 = dma.done.wait (%p1266_p0), %s271_s11, 1024  }
  0x7c   : > { %821 = vsyncadd (%p1266_p0), %s271_s11, 4294966272  ;;  %s279_s12 = sand.u32 1, %s941_s21   ;;  %s1150_s29 = scalar_lea.vmem [#allocation5], %s553_s15 }
  0x7d   : > { %s280_s4 = scalar_lea.sflag [#allocation6], %s279_s12 }
  0x7e   : > { %823 = dma.done.wait (%p1266_p0), %s280_s4, 1024  }
  0x7f   : > { %825 = vsyncadd (%p1266_p0), %s280_s4, 4294966272  ;;  %s290_s25 = sand.u32 1, %s840_s13  }
  0x80   : > { %s1157_s9 = sshll.u32 %s290_s25, 4 }
  0x81   : > { %s292_s5 = scalar_lea.vmem [#allocation7], %s1157_s9 }
  0x82   : > { %827 = dma.done.wait (%p1096_p4), %s280_s4, 256  }
  0x83   : > { %829 = vsyncadd (%p1096_p4), %s280_s4, 4294967040  ;;  %p333_p10 = scmp.eq.s32.totalorder %s860_s18, 0 }
  0x84   : > { %vm339_vm0 = vcmask (%p333_p10), 0   ;;  %v875_v0 = vmov (%p333_p10), 0.0  }
  0x85   : > { %338 = sbr.rel (!%p333_p10) target bundleno = 140 (0x8c), region = 48  ;;  %340 = vst.msk [vmem:[#allocation8] sm:$0x1] (%p333_p10), %vm339_vm0, %v875_v0 }
  0x8c PF: > { %v341_v1 = vld [vmem:[%s274_s27] sm:$0xff]  ;;  %v342_v2 = vld [vmem:[%s274_s27 + $0x8] sm:$0xff]  ;;  %v343_v3 = vld [vmem:[%s274_s27 + $0x10] sm:$0xff]  ;;  %vm384_vm1 = vcmask 130048   ;;  %s876_s18 = smov [#allocation8]   ;;  %vm411_vm2 = vcmask 0  }
  0x8d   : > { %v344_v4 = vld [vmem:[%s274_s27 + $0x18] sm:$0xff]  ;;  %v345_v5 = vld [vmem:[%s274_s27 + $0x20] sm:$0xff]  ;;  %v346_v6 = vld [vmem:[%s274_s27 + $0x28] sm:$0xff]  ;;  %s422_s26 = sshll.u32 %s876_s18, 4  ;;  %p588_p4 = scmp.eq.s32.totalorder %s941_s21, 1  ;;  %s423_s26 = int_to_ptr.vmem [resolvable:$true] %s422_s26 }
  0x8e   : > { %v347_v7 = vld [vmem:[%s274_s27 + $0x30] sm:$0xff]  ;;  %v348_v8 = vld [vmem:[%s274_s27 + $0x38] sm:$0xff]  ;;  %v349_v9 = vld [vmem:[%s1150_s29] sm:$0xff]  ;;  %s756_s6 = scalar_lea.vmem %s423_s26, 16  ;;  %s762_s1 = scalar_lea.vmem %s423_s26, 32 }
  0x8f   : > { %v350_v10 = vld [vmem:[%s1150_s29 + $0x8] sm:$0xff]  ;;  %v351_v11 = vld [vmem:[%s1150_s29 + $0x10] sm:$0xff]  ;;  %v352_v12 = vld [vmem:[%s1150_s29 + $0x18] sm:$0xff]  ;;  %v357_v13 = vsub.f32 %v341_v1, %v349_v9  ;;  %p757_p8 = scmp.ne.s32.totalorder %s423_s26, %s756_s6  ;;  %p763_p11 = scmp.lt.s32.totalorder %s423_s26, %s423_s26 }
  0x90   : > { %v353_v14 = vld [vmem:[%s1150_s29 + $0x20] sm:$0xff]  ;;  %v354_v15 = vld [vmem:[%s1150_s29 + $0x28] sm:$0xff]  ;;  %v355_v16 = vld [vmem:[%s1150_s29 + $0x30] sm:$0xff]  ;;  %v358_v17 = vsub.f32 %v342_v2, %v350_v10  ;;  %v359_v18 = vsub.f32 %v343_v3, %v351_v11  ;;  %v360_v19 = vsub.f32 %v344_v4, %v352_v12  ;;  %p764_p12 = scmp.lt.s32.totalorder %s762_s1, %s756_s6 }
  0x91   : > { %v356_v20 = vld [vmem:[%s1150_s29 + $0x38] sm:$0xff]  ;;  %v361_v21 = vsub.f32 %v345_v5, %v353_v14  ;;  %v362_v22 = vsub.f32 %v346_v6, %v354_v15  ;;  %v365_v23 = vmul.f32 %v357_v13, %v357_v13  ;;  %v373_v24 = vld [vmem:[%s292_s5] sm:$0xff]  ;;  %v363_v26 = vsub.f32 %v347_v7, %v355_v16  ;;  %p758_p9 = pnand %p757_p8, %p588_p4 }
  0x92   : > { %v374_v25 = vld [vmem:[%s292_s5 + $0x8] sm:$0xff]  ;;  %v366_v27 = vmul.f32 %v358_v17, %v358_v17  ;;  %v367_v28 = vmul.f32 %v359_v18, %v359_v18  ;;  %v368_v29 = vmul.f32 %v360_v19, %v360_v19  ;;  %v364_v30 = vsub.f32 %v348_v8, %v356_v20  ;;  %v383_v1 = vld [vmem:[#allocation8] sm:$0x1]  ;;  %p765_p6 = por %p764_p12, %p763_p11 }
  0x93   : > { %v369_v31 = vmul.f32 %v361_v21, %v361_v21  ;;  %v375_v32 = vmul.f32 %v373_v24, %v365_v23  ;;  %v370_v33 = vmul.f32 %v362_v22, %v362_v22  ;;  %v371_v38 = vmul.f32 %v363_v26, %v363_v26  ;;  %p759_p7 = pneg %p758_p9 }
  0x94   : > { %v376_v34 = vmul.f32 %v374_v25, %v366_v27  ;;  %v377_v35 = vmul.f32 %v373_v24, %v367_v28  ;;  %v378_v36 = vmul.f32 %v374_v25, %v368_v29  ;;  %v372_v43 = vmul.f32 %v364_v30, %v364_v30 }
  0x95   : > { %v385_v37 = vsel %vm384_vm1, %v375_v32, 0.0  ;;  %v379_v39 = vmul.f32 %v373_v24, %v369_v31  ;;  %v380_v44 = vmul.f32 %v374_v25, %v370_v33  ;;  %v381_v47 = vmul.f32 %v373_v24, %v371_v38  ;;  %p766_p3 = pnand %p765_p6, %p759_p7 }
  0x96   : > { %v386_v40 = vsel %vm384_vm1, %v376_v34, 0.0  ;;  %v388_v41 = vsel %vm384_vm1, %v377_v35, 0.0  ;;  %v390_v45 = vsel %vm384_vm1, %v378_v36, 0.0  ;;  %v382_v50 = vmul.f32 %v374_v25, %v372_v43 }
  0x97   : > { %v387_v42 = vadd.f32 %v386_v40, %v385_v37  ;;  %v392_v48 = vsel %vm384_vm1, %v379_v39, 0.0  ;;  %v394_v51 = vsel %vm384_vm1, %v380_v44, 0.0  ;;  %v396_v53 = vsel %vm384_vm1, %v381_v47, 0.0 }
  0x98   : > { %v398_v55 = vsel %vm384_vm1, %v382_v50, 0.0 }
  0x99   : > { %v389_v46 = vadd.f32 %v388_v41, %v387_v42 }
  0x9b   : > { %v391_v49 = vadd.f32 %v390_v45, %v389_v46 }
  0x9d   : > { %v393_v52 = vadd.f32 %v392_v48, %v391_v49 }
  0x9f   : > { %v395_v54 = vadd.f32 %v394_v51, %v393_v52 }
  0xa1   : > { %v397_v56 = vadd.f32 %v396_v53, %v395_v54 }
  0xa3   : > { %v399_v57 = vadd.f32 %v398_v55, %v397_v56 }
  0xa5   : > { %400 = vadd.xlane.f32.xlu0 %v399_v57 }
 0x132   : > { %v401_v58 = vpop.xlane.xlu0 %400 }
 0x133   : > { %v402_v59 = vrot.slane %v401_v58, 4 }
 0x135   : > { %v403_v60 = vadd.f32 %v402_v59, %v401_v58 }
 0x137   : > { %v404_v61 = vrot.slane %v403_v60, 2 }
 0x139   : > { %v405_v62 = vadd.f32 %v404_v61, %v403_v60 }
 0x13b   : > { %v406_v63 = vrot.slane %v405_v62, 1 }
 0x13d   : > { %v407_v0 = vadd.f32 %v406_v63, %v405_v62 }
 0x13f   : > { %565 = vpush %v407_v0 }
 0x170   : > { %s566_s24 = spop %565 }
 0x171   : > { %v409_v2 = vstv %s566_s24 }
 0x172   : > { %v410_v3 = vadd.f32 %v409_v2, %v383_v1 }
 0x174   : > { %412 = vst.msk [vmem:[#allocation8] sm:$0x1] %vm411_vm2, %v410_v3 }
 0x175   : > { %769 = shalt.err (!%p766_p3)
}
 0x176   : > { %s770_s8 = scalar_lea.hbm %s1238_s3, 16 }
 0x177   : > { %p771_p2 = scmp.ne.s32.totalorder %s1238_s3, %s770_s8  ;;  %p776_p13 = scmp.lt.u32.totalorder %s770_s8, %s1238_s3 }
 0x179   : > { %p772_p5 = pnand %p771_p2, %p588_p4 }
 0x17b   : > { %p773_p1 = pneg %p772_p5 }
 0x17d   : > { %p778_p0 = pnand %p776_p13, %p773_p1 }
 0x17f   : > { %781 = shalt.err (!%p778_p0)
}
 0x180   : > { %574 = dma.vmem_to_hbm [thread:$0]  (%p588_p4), %s423_s26, 16, %s1238_s3, [#allocation4]  }
 0x181   : > { %831 = dma.done.wait (%p588_p4), [#allocation4], 16  }
 0x182   : > { %833 = vsyncadd (%p588_p4), [#allocation4], 4294967280 }
 0x183 PF: > { %s20_s20 = sadd.s32 1, %s868_s20   ;;  %s1267_s12 = smov %s840_s13 }
 0x184   : > { %p17_p10 = scmp.ge.s32.totalorder %s20_s20, 4   ;;  %s1268_s13 = smov %s844_s14 }
 0x185   : > { %s1269_s14 = smov %s1084_s10  ;;  %s1270_s15 = smov %s852_s16 }
 0x186   : > { %s1271_s16 = smov %s856_s17  ;;  %s1272_s17 = smov %s975_s30 }
 0x187   : > { %s1273_s18 = smov %s864_s19  ;;  %s1274_s19 = smov %s1276_s22 }
 0x188   :  { %19 = sbr.rel (!%p17_p10) target bundleno = 11 (0xb), region = 98 }
 0x18f   :  { %435 = vsyncpa [#allocation3], 1 }
 0x190   :  { %437 = vsyncpa [#allocation3 + $0x1], 1 }
 0x191   :  { %438 = vsyncpa [#allocation6], 1 }
 0x192   :  { %440 = vsyncpa [#allocation6 + $0x1], 1 }
 0x193   :  { %441 = vsyncpa [#allocation4], 1 }
 0x194   :  { %443 = vsyncpa [#allocation4 + $0x1], 1 }

</bundles_post_ra>
